<compile_context>
chip_gen: v6e
topology: v6e:2x2x1
jax: 0.10.0
libtpu: 0.0.40
codegen_flags: <defaults>
</compile_context>

<pallas_src>
import functools

import jax
import jax.numpy as jnp
from jax.experimental import pallas as pl
from jax.experimental.pallas import tpu as pltpu


def _round_up(v, m):
    return ((v + m - 1) // m) * m


# ---------------------------------------------------------------------------
# Generic tiled matmul + bias kernel (input projection and FC/vocab projection)
# Accumulates directly into the resident f32 output block (no acc scratch).
# ---------------------------------------------------------------------------
def _matmul_bias_kernel(x_ref, w_ref, b_ref, o_ref):
    @pl.when(pl.program_id(2) == 0)
    def _():
        o_ref[...] = jnp.zeros_like(o_ref)

    o_ref[...] += jnp.dot(x_ref[...], w_ref[...],
                          preferred_element_type=jnp.float32)

    @pl.when(pl.program_id(2) == pl.num_programs(2) - 1)
    def _():
        o_ref[...] += b_ref[...]          # (1, tn) broadcasts over (tm, tn)


def matmul_bias(x, w, b, *, tm=256, tn=256, tk=512,
                compute_dtype=jnp.bfloat16):
    """x: (M, K), w: (K, N), b: (1, N) float32 -> (M, N) float32.

    Operands are cast to `compute_dtype` (bf16 is MXU-native on v5e/v6e/v7x);
    accumulation stays f32.  Dims are padded to tile multiples so non-divisible
    shapes (real vocab sizes) never fall back to full-dimension blocks.
    """
    M, K = x.shape
    K2, N = w.shape
    assert K == K2 and b.shape == (1, N)

    # Tile selection: big MXU-friendly tiles, capped by the padded dims.
    tm = min(tm, _round_up(M, 8))
    tk = min(tk, _round_up(K, 128))
    tn = min(tn, _round_up(N, 128))
    # Guarantee >= 2 parallel output tiles when possible so the ("parallel",
    # "parallel", "arbitrary") grid can shard across v7x's two TensorCores.
    while ((_round_up(M, tm) // tm) * (_round_up(N, tn) // tn) < 2
           and tn % 256 == 0):
        tn //= 2

    Mp, Kp, Np = _round_up(M, tm), _round_up(K, tk), _round_up(N, tn)
    if (Mp, Kp) != (M, K):
        x = jnp.pad(x, ((0, Mp - M), (0, Kp - K)))
    if (Kp, Np) != (K, N):
        w = jnp.pad(w, ((0, Kp - K), (0, Np - N)))
    if Np != N:
        b = jnp.pad(b, ((0, 0), (0, Np - N)))
    x = x.astype(compute_dtype)
    w = w.astype(compute_dtype)

    # Explicit VMEM budget: double-buffered inputs + resident f32 output block.
    itemsize = jnp.dtype(compute_dtype).itemsize
    vmem_need = (2 * (tm * tk + tk * tn + tn) * itemsize + 2 * tm * tn * 4)
    vmem_limit = int(min(max(2 * vmem_need, 32 * 1024 * 1024),
                         96 * 1024 * 1024))

    out = pl.pallas_call(
        _matmul_bias_kernel,
        out_shape=jax.ShapeDtypeStruct((Mp, Np), jnp.float32),
        grid_spec=pltpu.PrefetchScalarGridSpec(
            num_scalar_prefetch=0,
            grid=(Mp // tm, Np // tn, Kp // tk),
            in_specs=[
                pl.BlockSpec((tm, tk), lambda i, j, k: (i, k)),
                pl.BlockSpec((tk, tn), lambda i, j, k: (k, j)),
                pl.BlockSpec((1, tn), lambda i, j, k: (0, j)),
            ],
            out_specs=pl.BlockSpec((tm, tn), lambda i, j, k: (i, j)),
        ),
        compiler_params=pltpu.CompilerParams(
            dimension_semantics=("parallel", "parallel", "arbitrary"),
            vmem_limit_bytes=vmem_limit),
    )(x, w, b)

    if (Mp, Np) != (M, N):
        out = out[:M, :N]
    return out


# ---------------------------------------------------------------------------
# Recurrent LSTM kernel: grid over time chunks, only h @ W_hh^T per step.
# h/c carried in resident hT/cT output blocks (constant index_map).
# Hidden states are stored BATCH-FIRST so no wrapper transpose is needed.
# ---------------------------------------------------------------------------
def _lstm_chunk_kernel(gx_ref, h0_ref, c0_ref, whh_ref,
                       h_all_ref, hT_ref, cT_ref, *, hidden_dim, chunk):
    H = hidden_dim

    @pl.when(pl.program_id(0) == 0)
    def _():
        hT_ref[...] = h0_ref[...]
        cT_ref[...] = c0_ref[...]

    h = hT_ref[...]                       # (B, H) carried state
    c = cT_ref[...]
    w_hh = whh_ref[...]                   # (H, 4H), resident across the grid

    # TODO(synk): hold W_hh weight-stationary in the MXU staging registers via
    # pltpu.matmul_push_rhs / matmul_acc_lhs / matmul_pop to cut the per-step
    # weight-push latency (the recurrence is latency-bound at small B).
    for j in range(chunk):                # static unroll (chunk <= 32, tiny state)
        # precomputed input projection (+ fused b_ih + b_hh) for this step
        gates = gx_ref[j] + jnp.dot(h, w_hh, preferred_element_type=jnp.float32)
        # PyTorch gate order: i, f, g, o
        i_g = jax.nn.sigmoid(gates[:, 0 * H:1 * H])
        f_g = jax.nn.sigmoid(gates[:, 1 * H:2 * H])
        g_g = jnp.tanh(gates[:, 2 * H:3 * H])
        o_g = jax.nn.sigmoid(gates[:, 3 * H:4 * H])
        c = f_g * c + i_g * g_g
        h = o_g * jnp.tanh(c)
        h_all_ref[:, j, :] = h            # batch-first store -> no HBM transpose

    hT_ref[...] = h                       # resident; flushed once at the end
    cT_ref[...] = c


def lstm_recurrence(gates_x, h0, c0, whh_t, *, chunk=None):
    """gates_x: (T, B, 4H) time-major; h0/c0: (B, H); whh_t: (H, 4H).
    Returns (h_all (B, T, H) batch-first, hT (B, H), cT (B, H))."""
    T, B, fourH = gates_x.shape
    H = fourH // 4
    if chunk is None:
        if T <= 32:
            chunk = T
        else:
            chunk = next(c for c in (32, 16, 8, 4, 2, 1) if T % c == 0)
    # TODO(synk): ragged T needs padding or a masked tail chunk.
    assert T % chunk == 0

    kernel = functools.partial(_lstm_chunk_kernel, hidden_dim=H, chunk=chunk)
    h_all, hT, cT = pl.pallas_call(
        kernel,
        out_shape=(
            jax.ShapeDtypeStruct((B, T, H), jnp.float32),   # batch-first
            jax.ShapeDtypeStruct((B, H), jnp.float32),
            jax.ShapeDtypeStruct((B, H), jnp.float32),
        ),
        grid_spec=pltpu.PrefetchScalarGridSpec(
            num_scalar_prefetch=0,
            grid=(T // chunk,),
            in_specs=[
                pl.BlockSpec((chunk, B, 4 * H), lambda t: (t, 0, 0)),  # gates_x
                pl.BlockSpec((B, H), lambda t: (0, 0)),                # h0
                pl.BlockSpec((B, H), lambda t: (0, 0)),                # c0
                pl.BlockSpec((H, 4 * H), lambda t: (0, 0)),            # W_hh^T
            ],
            out_specs=[
                pl.BlockSpec((B, chunk, H), lambda t: (0, t, 0)),      # H_all (batch-first)
                pl.BlockSpec((B, H), lambda t: (0, 0)),                # h_T (resident carry)
                pl.BlockSpec((B, H), lambda t: (0, 0)),                # c_T (resident carry)
            ],
        ),
        compiler_params=pltpu.CompilerParams(
            dimension_semantics=("arbitrary",)),   # sequential time recurrence
    )(gates_x, h0, c0, whh_t)
    return h_all, hT, cT


# ---------------------------------------------------------------------------
# Full forward pass (matches PyTorch LanguageModel.forward semantics)
# ---------------------------------------------------------------------------
def language_model_forward(tokens, hidden, params, *, matmul_dtype=jnp.bfloat16):
    """tokens: (B, T) int32 ; hidden: (h0, c0) each (1, B, H).
    Returns (logits (B, T, V), (hT, cT) each (1, B, H))."""
    emb, w_ih, w_hh, b_ih, b_hh, w_fc, b_fc = (
        params["emb"], params["w_ih"], params["w_hh"], params["b_ih"],
        params["b_hh"], params["w_fc"], params["b_fc"])

    h0, c0 = hidden
    B, T = tokens.shape
    V, E = emb.shape
    H = w_hh.shape[1]

    # TODO(synk): embedding gather stays in XLA; a scalar-prefetch pl.Element
    # row-gather kernel could fold it into the input-projection matmul and skip
    # the (T*B, E) activation round trip through HBM.
    x_tm = jnp.take(emb, tokens.T, axis=0)                       # (T, B, E) time-major

    # Hoisted input projection: one big MXU matmul (bf16 operands, f32 acc).
    bias = (b_ih + b_hh).reshape(1, 4 * H)
    gates_x = matmul_bias(x_tm.reshape(T * B, E), w_ih.T, bias,
                          compute_dtype=matmul_dtype)            # (T*B, 4H)
    gates_x = gates_x.reshape(T, B, 4 * H)

    # Recurrent kernel: time-chunked, only h @ W_hh^T per step (f32),
    # hidden states written batch-first.
    h_all, hT, cT = lstm_recurrence(gates_x, h0[0], c0[0], w_hh.T)

    # Hoisted vocab projection straight off the batch-first hidden states.
    # TODO(synk): for small V (W_fc < a few MiB) this could be fused into the
    # recurrence chunk epilogue; kept split so large vocabs stay within v7x VMEM.
    logits = matmul_bias(h_all.reshape(B * T, H), w_fc.T, b_fc.reshape(1, V),
                         compute_dtype=matmul_dtype).reshape(B, T, V)

    return logits, (hT[None], cT[None])


# ---------------------------------------------------------------------------
# Pure-JAX reference for validation
# ---------------------------------------------------------------------------
def _reference_forward(tokens, hidden, params):
    emb, w_ih, w_hh, b_ih, b_hh, w_fc, b_fc = (
        params["emb"], params["w_ih"], params["w_hh"], params["b_ih"],
        params["b_hh"], params["w_fc"], params["b_fc"])
    h0, c0 = hidden
    H = w_hh.shape[1]
    x = jnp.take(emb, tokens, axis=0)                  # (B, T, E)

    def step(carry, x_t):
        h, c = carry
        gates = x_t @ w_ih.T + h @ w_hh.T + b_ih + b_hh
        i = jax.nn.sigmoid(gates[:, 0 * H:1 * H])
        f = jax.nn.sigmoid(gates[:, 1 * H:2 * H])
        g = jnp.tanh(gates[:, 2 * H:3 * H])
        o = jax.nn.sigmoid(gates[:, 3 * H:4 * H])
        c = f * c + i * g
        h = o * jnp.tanh(c)
        return (h, c), h

    (hT, cT), hs = jax.lax.scan(step, (h0[0], c0[0]),
                                jnp.transpose(x, (1, 0, 2)))
    out = jnp.transpose(hs, (1, 0, 2)) @ w_fc.T + b_fc
    return out, (hT[None], cT[None])


if __name__ == "__main__":
    # Small, layout-friendly shapes consistent with the module:
    # B=8 (full sublanes), H=128 (vreg-aligned gate slices), V=256 (lane-dense).
    VOCAB, EMB, HID = 256, 128, 128
    B, T = 8, 16

    key = jax.random.PRNGKey(0)
    k = jax.random.split(key, 10)
    scale = 1.0 / jnp.sqrt(HID)
    params = {
        "emb":  jax.random.normal(k[0], (VOCAB, EMB), jnp.float32),
        "w_ih": jax.random.uniform(k[1], (4 * HID, EMB), jnp.float32, -scale, scale),
        "w_hh": jax.random.uniform(k[2], (4 * HID, HID), jnp.float32, -scale, scale),
        "b_ih": jax.random.uniform(k[3], (4 * HID,), jnp.float32, -scale, scale),
        "b_hh": jax.random.uniform(k[4], (4 * HID,), jnp.float32, -scale, scale),
        "w_fc": jax.random.uniform(k[5], (VOCAB, HID), jnp.float32, -scale, scale),
        "b_fc": jax.random.uniform(k[6], (VOCAB,), jnp.float32, -scale, scale),
    }

    tokens = jax.random.randint(k[7], (B, T), 0, VOCAB, dtype=jnp.int32)
    h0 = jax.random.normal(k[8], (1, B, HID), jnp.float32)
    c0 = jax.random.normal(k[9], (1, B, HID), jnp.float32)

    ref_logits, (ref_hT, ref_cT) = _reference_forward(tokens, (h0, c0), params)

    # 1) Exact-precision path: validates the kernel structure tightly.
    logits32, (hT32, cT32) = language_model_forward(
        tokens, (h0, c0), params, matmul_dtype=jnp.float32)
    jax.block_until_ready((logits32, hT32, cT32))
    assert logits32.shape == (B, T, VOCAB)
    assert hT32.shape == (1, B, HID) and cT32.shape == (1, B, HID)
    assert jnp.allclose(logits32, ref_logits, atol=1e-3, rtol=1e-3)
    assert jnp.allclose(hT32, ref_hT, atol=1e-3, rtol=1e-3)
    assert jnp.allclose(cT32, ref_cT, atol=1e-3, rtol=1e-3)

    # 2) Production path (bf16 MXU operands, f32 accumulation): relaxed
    #    tolerance because bf16 rounding of gates compounds through the T-step
    #    recurrence before reaching the logits.
    logits, (hT, cT) = language_model_forward(tokens, (h0, c0), params)
    jax.block_until_ready((logits, hT, cT))
    assert logits.shape == (B, T, VOCAB)
    assert jnp.allclose(logits, ref_logits, atol=1e-1, rtol=1e-1)
    assert jnp.allclose(hT, ref_hT, atol=1e-1, rtol=1e-1)
    assert jnp.allclose(cT, ref_cT, atol=1e-1, rtol=1e-1)

    print("KERNEL_OK")
</pallas_src>

<mosaic_0001>
module attributes {stable_mosaic.version = 11 : i64} {
  func.func @_matmul_bias_kernel(%arg0: i32, %arg1: i32, %arg2: i32, %arg3: memref<128x128xf32, #tpu.memory_space<vmem>>, %arg4: memref<128x256xf32, #tpu.memory_space<vmem>>, %arg5: memref<1x256xf32, #tpu.memory_space<vmem>>, %arg6: memref<128x256xf32, #tpu.memory_space<vmem>>) attributes {dimension_semantics = [#tpu.dimension_semantics<parallel>, #tpu.dimension_semantics<parallel>, #tpu.dimension_semantics<arbitrary>], iteration_bounds = array<i64: 1, 2, 1>, scalar_prefetch = 0 : i64, scratch_operands = 0 : i64, tpu.core_type = #tpu.core_type<tc>, window_params = [{transform_indices = @transform_0, window_bounds = array<i64: 128, 128>}, {transform_indices = @transform_1, window_bounds = array<i64: 128, 256>}, {transform_indices = @transform_2, window_bounds = array<i64: 1, 256>}, {transform_indices = @transform_3, window_bounds = array<i64: 128, 256>}]} {
    %c0_i32 = arith.constant 0 : i32
    %0 = arith.cmpi eq, %arg2, %c0_i32 : i32
    %1 = arith.extui %0 : i1 to i32
    %c0_i32_0 = arith.constant 0 : i32
    %2 = arith.cmpi ne, %1, %c0_i32_0 : i32
    scf.if %2 {
      %cst_10 = arith.constant 0.000000e+00 : f32
      %12 = vector.broadcast %cst_10 : f32 to vector<128x256xf32>
      %c0_11 = arith.constant 0 : index
      %c0_12 = arith.constant 0 : index
      %13 = vector.load %arg6[%c0_11, %c0_12] : memref<128x256xf32, #tpu.memory_space<vmem>>, vector<128x256xf32>
      tpu.vector_store %arg6[%c0_11, %c0_12], %12 {strides = array<i32>} : memref<128x256xf32, #tpu.memory_space<vmem>>, vector<128x256xf32>,
    } else {
    }
    %c0 = arith.constant 0 : index
    %c0_1 = arith.constant 0 : index
    %3 = vector.load %arg6[%c0, %c0_1] : memref<128x256xf32, #tpu.memory_space<vmem>>, vector<128x256xf32>
    %c0_2 = arith.constant 0 : index
    %c0_3 = arith.constant 0 : index
    %4 = vector.load %arg3[%c0_2, %c0_3] : memref<128x128xf32, #tpu.memory_space<vmem>>, vector<128x128xf32>
    %c0_4 = arith.constant 0 : index
    %c0_5 = arith.constant 0 : index
    %5 = vector.load %arg4[%c0_4, %c0_5] : memref<128x256xf32, #tpu.memory_space<vmem>>, vector<128x256xf32>
    %cst = arith.constant dense<0.000000e+00> : vector<128x256xf32>
    %6 = tpu.matmul %4, %5, %cst {dimension_numbers = #tpu.dot_dimension_numbers<[1], [0], [0], [1], [0, 0, 1, 1], [], []>} : vector<128x128xf32>, vector<128x256xf32>, vector<128x256xf32> -> vector<128x256xf32>
    %7 = arith.addf %3, %6 : vector<128x256xf32>
    %c0_6 = arith.constant 0 : index
    %c0_7 = arith.constant 0 : index
    %8 = vector.load %arg6[%c0_6, %c0_7] : memref<128x256xf32, #tpu.memory_space<vmem>>, vector<128x256xf32>
    tpu.vector_store %arg6[%c0_6, %c0_7], %7 {strides = array<i32>} : memref<128x256xf32, #tpu.memory_space<vmem>>, vector<128x256xf32>,
    %c0_i32_8 = arith.constant 0 : i32
    %9 = arith.cmpi eq, %arg2, %c0_i32_8 : i32
    %10 = arith.extui %9 : i1 to i32
    %c0_i32_9 = arith.constant 0 : i32
    %11 = arith.cmpi ne, %10, %c0_i32_9 : i32
    scf.if %11 {
      %c0_10 = arith.constant 0 : index
      %c0_11 = arith.constant 0 : index
      %12 = vector.load %arg6[%c0_10, %c0_11] : memref<128x256xf32, #tpu.memory_space<vmem>>, vector<128x256xf32>
      %c0_12 = arith.constant 0 : index
      %c0_13 = arith.constant 0 : index
      %13 = vector.load %arg5[%c0_12, %c0_13] : memref<1x256xf32, #tpu.memory_space<vmem>>, vector<1x256xf32>
      %14 = vector.broadcast %13 : vector<1x256xf32> to vector<128x256xf32>
      %15 = arith.addf %12, %14 : vector<128x256xf32>
      %c0_14 = arith.constant 0 : index
      %c0_15 = arith.constant 0 : index
      %16 = vector.load %arg6[%c0_14, %c0_15] : memref<128x256xf32, #tpu.memory_space<vmem>>, vector<128x256xf32>
      tpu.vector_store %arg6[%c0_14, %c0_15], %15 {strides = array<i32>} : memref<128x256xf32, #tpu.memory_space<vmem>>, vector<128x256xf32>,
    } else {
    }
    return
  }
  func.func @transform_0(%arg0: i32, %arg1: i32, %arg2: i32) -> (i32, i32) {
    %c0_i32 = arith.constant 0 : i32
    return %arg0, %arg2 : i32, i32
  }
  func.func @transform_1(%arg0: i32, %arg1: i32, %arg2: i32) -> (i32, i32) {
    %c0_i32 = arith.constant 0 : i32
    return %arg2, %arg1 : i32, i32
  }
  func.func @transform_2(%arg0: i32, %arg1: i32, %arg2: i32) -> (i32, i32) {
    %c0_i32 = arith.constant 0 : i32
    %c0_i32_0 = arith.constant 0 : i32
    return %c0_i32, %arg1 : i32, i32
  }
  func.func @transform_3(%arg0: i32, %arg1: i32, %arg2: i32) -> (i32, i32) {
    %c0_i32 = arith.constant 0 : i32
    return %arg0, %arg1 : i32, i32
  }
}

</mosaic_0001>

<bundles_post_ra>
// kernel: tpu_custom_call.1
= control target key start
LH: loop header
LB: loop body
LE: loop exit
PB: predicated region body
PF: predicated region fallthrough
CT: control target
= control target key end

     0   :  { %8 = vsyncpa [#allocation3], 0  ;;  %s1546_s0 = inlined_call_operand.hbm [shape: f32[128,128], index: 0, kind: input, shape index: {}]   ;;  %s1547_s1 = inlined_call_operand.hbm [shape: f32[128,512], index: 1, kind: input, shape index: {}]   ;;  %s1548_s2 = inlined_call_operand.hbm [shape: f32[1,512], index: 2, kind: input, shape index: {}]   ;;  %s1549_s3 = inlined_call_operand.hbm [shape: f32[128,512], index: 3, kind: output, shape index: {}]  }
   0x1   :  { %9 = vsyncpa [#allocation6], 0 }
   0x2   :  { %11 = vsyncpa [#allocation6 + $0x1], 0 }
   0x3   :  { %12 = vsyncpa [#allocation4], 0 }
   0x4   :  { %14 = vsyncpa [#allocation4 + $0x1], 0  ;;  %s1221_s12 = smov 0   ;;  %s1223_s13 = smov 0  }
   0x5   :  { %s1225_s14 = smov 0   ;;  %s1227_s15 = smov 0  }
   0x6   :  { %s1229_s16 = smov 0   ;;  %s1231_s17 = smov 0  }
   0x7 LB: > { %s35_s18 = sadd.s32 1, %s1182_s16  ;;  %s76_s19 = sadd.s32 1, %s1174_s14  ;;  %s1186_s17 = sphi %s1231_s17, %s20_s17   ;;  %s1182_s16 = sphi %s1229_s16, %s1569_s16   ;;  %s1178_s15 = sphi %s1227_s15, %s1568_s15   ;;  %s1174_s14 = sphi %s1225_s14, %s1567_s14   ;;  %s1170_s13 = sphi %s1223_s13, %s1566_s13   ;;  %s1166_s12 = sphi %s1221_s12, %s1565_s12  }
   0x8   : > { %p37_p0 = scmp.ge.s32.totalorder %s35_s18, 2  ;;  %p83_p1 = scmp.ne.s32.totalorder %s1174_s14, %s1170_s13 }
   0x9   : > { %p84_p2 = scmp.eq.s32.totalorder %s1186_s17, 0  ;;  %p959_p5 = scmp.lt.s32.totalorder %s1186_s17, 2 }
   0xa   : > { %s1571_s18 = smov (%p37_p0, %s35_s18), 0  ;;  %s184_s21 = sand.u32 1, %s1186_s17  }
   0xb   : > { %p85_p4 = por %p84_p2, %p83_p1  ;;  %s72_s20 = ssub.s32 %s1182_s16, %s1571_s18 }
   0xc   : > { %p74_p6 = scmp.eq.s32.totalorder %s72_s20, 0  ;;  %s186_s22 = sand.u32 1, %s1174_s14  }
   0xd   : > { %s898_s23 = sshll.u32 %s1182_s16, 8  ;;  %s882_s25 = sshll.u32 %s186_s22, 8 }
   0xe   : > { %s1269_s24 = scalar_select %p74_p6, %s1174_s14, %s76_s19  }
   0xf   : > { %s197_s28 = scalar_lea.hbm %s1547_s1, %s898_s23  ;;  %p1276_p7 = pnand %p959_p5, %p85_p4 }
  0x10   : > { %s188_s30 = scalar_lea.vmem [#allocation5], %s882_s25  ;;  %s1280_s5 = scalar_lea.sflag [#allocation6], %s184_s21 }
  0x11   : > { %s198_s4 = sshll.u32 %s188_s30, 4  ;;  %p1551_p8 = pneg %p1276_p7  ;;  %s199_s4 = int_to_ptr.vmem [resolvable:$true] %s198_s4 }
  0x12   : > { %s1033_s6 = scalar_lea.vmem %s199_s4, 4096  ;;  %s1188_s7 = smov [#allocation5]  }
  0x13   : > { %p1034_p9 = scmp.ne.s32.totalorder %s199_s4, %s1033_s6  ;;  %s1038_s8 = sshll.u32 %s1188_s7, 4  ;;  %s1039_s8 = int_to_ptr.vmem [resolvable:$false] %s1038_s8 }
  0x14   : > { %s1040_s9 = scalar_lea.vmem %s1039_s8, 8192  ;;  %p1041_p12 = scmp.lt.s32.totalorder %s199_s4, %s1039_s8 }
  0x15   : > { %p1036_p10 = pnand %p1034_p9, %p1551_p8  ;;  %p1042_p13 = scmp.lt.s32.totalorder %s1040_s9, %s1033_s6 }
  0x17   : > { %p1037_p11 = pneg %p1036_p10  ;;  %p1043_p0 = por %p1042_p13, %p1041_p12 }
  0x19   : > { %p1044_p2 = pnand %p1043_p0, %p1037_p11 }
  0x1b   : > { %1047 = shalt.err (!%p1044_p2)
}
  0x1c   : > { %s1189_s10 = smov 512   ;;  %s1190_s11 = smov 256  }
  0x1d   : > { %s1191_s19 = smov 16   ;;  %s1291_s20 = sadd.s32 4294967295, %s1186_s17  }
  0x1e   : > { %950 = dma.hbm_to_vmem [thread:$0]  (!%p1276_p7), %s197_s28, 4096, %s199_s4, %s1280_s5, %s1189_s10, %s1190_s11, %s1191_s19  }
  0x1f   : > { %s878_s21 = sadd.s32 4294967294, %s1186_s17   ;;  %p89_p4 = scmp.ne.s32.totalorder %s1170_s13, %s1166_s12 }
  0x20   : > { %p1550_p5 = scmp.eq.s32.totalorder %s1291_s20, 0  ;;  %p141_p6 = scmp.eq.s32.totalorder %s1291_s20, 1 }
  0x21   : > { %p147_p9 = scmp.eq.s32.totalorder %s878_s21, 1  ;;  %p879_p11 = scmp.ge.s32.totalorder %s1186_s17, 1 }
  0x22   : > { %p1300_p10 = por %p1550_p5, %p89_p4  ;;  %p1308_p12 = por %p141_p6, %p83_p1 }
  0x23   : > { %p1312_p13 = por %p147_p9, %p89_p4  ;;  %p154_p0 = scmp.lt.s32.totalorder %s1186_s17, 3 }
  0x24   : > { %s1555_s25 = scalar_select %p1308_p12, 1, 0 }
  0x25   : > { %s1556_s26 = scalar_select %p1312_p13, 1, 0 }
  0x26   : > { %p1317_p2 = pnand %p879_p11, %p154_p0  ;;  %s1192_s28 = smov [#allocation2]  }
  0x27   : > { %s170_s30 = sshll.u32 %s1192_s28, 4  ;;  %s885_s4 = sshll.u32 %s186_s22, 1  ;;  %s171_s30 = int_to_ptr.vmem [resolvable:$true] %s170_s30 }
  0x28   : > { %p943_p3 = pneg %p1317_p2  ;;  %s899_s6 = sshll.u32 %s1182_s16, 5 }
  0x29   : > { %s1335_s10 = scalar_lea.hbm %s1548_s2, %s899_s6  ;;  %s212_s11 = scalar_lea.vmem [#allocation7], %s885_s4 }
  0x2a   : > { %p1328_p1 = pnand %p943_p3, %p1550_p5  ;;  %s220_s19 = sshll.u32 %s212_s11, 4  ;;  %s221_s19 = int_to_ptr.vmem [resolvable:$true] %s220_s19 }
  0x2b   : > { %s1059_s21 = scalar_lea.vmem %s171_s30, 2048  ;;  %p1067_p0 = scmp.lt.s32.totalorder %s171_s30, %s171_s30 }
  0x2c   : > { %p1050_p4 = pneg %p1328_p1  ;;  %p1060_p6 = scmp.ne.s32.totalorder %s171_s30, %s1059_s21 }
  0x2d   : > { %p1068_p3 = scmp.lt.s32.totalorder %s1059_s21, %s1059_s21 }
  0x2e   : > { %p1062_p9 = pnand %p1060_p6, %p1050_p4 }
  0x2f   : > { %p1069_p5 = por %p1068_p3, %p1067_p0 }
  0x30   : > { %p1063_p11 = pneg %p1062_p9 }
  0x32   : > { %p1070_p8 = pnand %p1069_p5, %p1063_p11 }
  0x34   : > { %1073 = shalt.err (!%p1070_p8)
}
  0x35   : > { %s1193_s22 = smov 128   ;;  %s1194_s28 = smov 8  }
  0x36   : > { %946 = dma.hbm_to_vmem [thread:$0]  (!%p1328_p1), %s1546_s0, 2048, %s171_s30, [#allocation3], %s1193_s22, %s1193_s22, %s1194_s28  }
  0x37   : > { %s1087_s8 = scalar_lea.vmem %s221_s19, 32  ;;  %p1559_p12 = pneg %p1276_p7 }
  0x38   : > { %p1088_p13 = scmp.ne.s32.totalorder %s221_s19, %s1087_s8  ;;  %s1195_s9 = smov [#allocation7]  }
  0x39   : > { %s1092_s11 = sshll.u32 %s1195_s9, 4  ;;  %s1093_s11 = int_to_ptr.vmem [resolvable:$false] %s1092_s11 }
  0x3a   : > { %p1090_p4 = pnand %p1088_p13, %p1559_p12  ;;  %s1094_s21 = scalar_lea.vmem %s1093_s11, 64 }
  0x3b   : > { %p1095_p8 = scmp.lt.s32.totalorder %s221_s19, %s1093_s11  ;;  %p1096_p5 = scmp.lt.s32.totalorder %s1094_s21, %s1087_s8 }
  0x3c   : > { %p1091_p6 = pneg %p1090_p4 }
  0x3d   : > { %p1097_p9 = por %p1096_p5, %p1095_p8 }
  0x3f   : > { %p1098_p11 = pnand %p1097_p9, %p1091_p6 }
  0x41   : > { %1101 = shalt.err (!%p1098_p11)
}
  0x42   : > { %953 = dma.hbm_to_vmem [thread:$0]  (!%p1276_p7), %s1335_s10, 32, %s221_s19, %s1280_s5  }
  0x43   : > { %229 = sbr.rel (%p1317_p2) target bundleno = 351 (0x15f), region = 32  ;;  %p1560_p12 = scmp.eq.s32.totalorder (!%p1317_p2), %s1291_s20, 0 }
  0x48   : > { %1153 = dma.done.wait (%p1560_p12), [#allocation3], 2048   ;;  %p1561_p13 = pmov %p1560_p12 }
  0x49   : > { %s235_s30 = sand.u32 1, %s1291_s20   ;;  %s1359_s7 = sand.u32 1, %s1170_s13  }
  0x4a   : > { %1155 = vsyncadd (%p1561_p13), [#allocation3], 4294965248  ;;  %s890_s29 = sshll.u32 %s1359_s7, 8  ;;  %s236_s22 = scalar_lea.sflag [#allocation6], %s235_s30 }
  0x4b   : > { %s1364_s5 = scalar_lea.vmem [#allocation5], %s890_s29 }
  0x4c   : > { %1157 = dma.done.wait (%p1300_p10), %s236_s22, 4128  }
  0x4d   : > { %1159 = vsyncadd (%p1300_p10), %s236_s22, 4294963168  ;;  %v1196_v0 = vmov 0.0   ;;  %v397_v1 = vld [vmem:[%s1364_s5 + $0xf8] sm:$0xff]  ;;  %v396_v2 = vld [vmem:[%s1364_s5 + $0xf0] sm:$0xff]  ;;  %v660_v49 = vlaneseq  ;;  %s891_s20 = sshll.u32 %s1359_s7, 1  ;;  %s1427_s27 = scalar_lea.vmem [#allocation8], %s890_s29 }
  0x4e   : > { %462 = vmatprep.mubr.f32.mxu0 %v1196_v0  ;;  %510 = vmatprep.mubr.f32.mxu1 %v1196_v0  ;;  %v395_v3 = vld [vmem:[%s1364_s5 + $0xe8] sm:$0xff]  ;;  %v394_v4 = vld [vmem:[%s1364_s5 + $0xe0] sm:$0xff]  ;;  %v393_v5 = vld [vmem:[%s1364_s5 + $0xd8] sm:$0xff]  ;;  %s248_s23 = scalar_lea.vmem [#allocation7], %s891_s20  ;;  %s900_s10 = sshll.u32 %s1178_s15, 8 }
  0x4f   : > { %398 = vmatprep.subr.mxu0 %v397_v1  ;;  %901 = vmatprep.subr.mxu1 %v397_v1  ;;  %v392_v6 = vld [vmem:[%s1364_s5 + $0xd0] sm:$0xff]  ;;  %v391_v7 = vld [vmem:[%s1364_s5 + $0xc8] sm:$0xff]  ;;  %v390_v8 = vld [vmem:[%s1364_s5 + $0xc0] sm:$0xff]  ;;  %v661_v50 = vshrl.u32 %v660_v49, 7  ;;  %s751_s19 = sshll.u32 %s1427_s27, 4  ;;  %s1490_s6 = scalar_lea.hbm %s1549_s3, %s900_s10  ;;  %s1492_s19 = int_to_ptr.vmem [resolvable:$true] %s751_s19 }
  0x50   : > { %399 = vmatpush1.msra.mxu0 %v396_v2  ;;  %917 = vmatpush1.msra.mxu1 %v396_v2  ;;  %v389_v9 = vld [vmem:[%s1364_s5 + $0xb8] sm:$0xff]  ;;  %v388_v10 = vld [vmem:[%s1364_s5 + $0xb0] sm:$0xff]  ;;  %v387_v11 = vld [vmem:[%s1364_s5 + $0xa8] sm:$0xff]  ;;  %s735_s4 = scalar_lea.sflag [#allocation4], %s1359_s7  ;;  %s1102_s8 = scalar_lea.vmem %s1492_s19, 4096 }
  0x51   : > { %400 = vmatprep.subr.mxu0 %v395_v3  ;;  %902 = vmatprep.subr.mxu1 %v395_v3  ;;  %v386_v12 = vld [vmem:[%s1364_s5 + $0xa0] sm:$0xff]  ;;  %v385_v13 = vld [vmem:[%s1364_s5 + $0x98] sm:$0xff]  ;;  %v384_v14 = vld [vmem:[%s1364_s5 + $0x90] sm:$0xff]  ;;  %v662_v51 = vsub.s32 0, %v661_v50  ;;  %v666_v53 = vsub.s32 1, %v661_v50  ;;  %p1103_p7 = scmp.ne.s32.totalorder %s1492_s19, %s1102_s8  ;;  %p1562_p10 = scmp.ne.s32.totalorder %s1555_s25, 0 }
  0x52   : > { %401 = vmatpush1.msra.mxu0 %v394_v4  ;;  %918 = vmatpush1.msra.mxu1 %v394_v4  ;;  %v383_v15 = vld [vmem:[%s1364_s5 + $0x88] sm:$0xff]  ;;  %v382_v16 = vld [vmem:[%s1364_s5 + $0x80] sm:$0xff]  ;;  %v381_v17 = vld [vmem:[%s1364_s5 + $0x78] sm:$0xff]  ;;  %s1197_s9 = smov [#allocation8]  }
  0x53   : > { %402 = vmatprep.subr.mxu0 %v393_v5  ;;  %903 = vmatprep.subr.mxu1 %v393_v5  ;;  %v380_v18 = vld [vmem:[%s1364_s5 + $0x70] sm:$0xff]  ;;  %v379_v19 = vld [vmem:[%s1364_s5 + $0x68] sm:$0xff]  ;;  %v378_v20 = vld [vmem:[%s1364_s5 + $0x60] sm:$0xff]  ;;  %p1104_p2 = pnand %p1103_p7, %p1562_p10  ;;  %s1106_s11 = sshll.u32 %s1197_s9, 4  ;;  %s1107_s11 = int_to_ptr.vmem [resolvable:$false] %s1106_s11 }
  0x54   : > { %403 = vmatpush1.msra.mxu0 %v392_v6  ;;  %919 = vmatpush1.msra.mxu1 %v392_v6  ;;  %v377_v21 = vld [vmem:[%s1364_s5 + $0x58] sm:$0xff]  ;;  %v376_v22 = vld [vmem:[%s1364_s5 + $0x50] sm:$0xff]  ;;  %v375_v23 = vld [vmem:[%s1364_s5 + $0x48] sm:$0xff]  ;;  %s1108_s21 = scalar_lea.vmem %s1107_s11, 8192  ;;  %p1109_p0 = scmp.lt.s32.totalorder %s1492_s19, %s1107_s11 }
  0x55   : > { %404 = vmatprep.subr.mxu0 %v391_v7  ;;  %904 = vmatprep.subr.mxu1 %v391_v7  ;;  %v374_v24 = vld [vmem:[%s1364_s5 + $0x40] sm:$0xff]  ;;  %v373_v25 = vld [vmem:[%s1364_s5 + $0x38] sm:$0xff]  ;;  %v372_v26 = vld [vmem:[%s1364_s5 + $0x30] sm:$0xff]  ;;  %p1105_p1 = pneg %p1104_p2  ;;  %p1110_p3 = scmp.lt.s32.totalorder %s1108_s21, %s1102_s8 }
  0x56   : > { %405 = vmatpush1.msra.mxu0 %v390_v8  ;;  %920 = vmatpush1.msra.mxu1 %v390_v8  ;;  %v371_v27 = vld [vmem:[%s1364_s5 + $0x28] sm:$0xff]  ;;  %v370_v28 = vld [vmem:[%s1364_s5 + $0x20] sm:$0xff]  ;;  %v369_v29 = vld [vmem:[%s1364_s5 + $0x18] sm:$0xff] }
  0x57   : > { %406 = vmatprep.subr.mxu0 %v389_v9  ;;  %905 = vmatprep.subr.mxu1 %v389_v9  ;;  %v368_v30 = vld [vmem:[%s1364_s5 + $0x10] sm:$0xff]  ;;  %v367_v31 = vld [vmem:[%s1364_s5 + $0x8] sm:$0xff]  ;;  %v366_v32 = vld [vmem:[%s1364_s5] sm:$0xff]  ;;  %p1111_p4 = por %p1110_p3, %p1109_p0 }
  0x58   : > { %407 = vmatpush1.msra.mxu0 %v388_v10  ;;  %921 = vmatpush1.msra.mxu1 %v388_v10  ;;  %v350_v33 = vld [vmem:[#allocation2] sm:$0xff]  ;;  %v351_v35 = vld [vmem:[#allocation2 + $0x8] sm:$0xff]  ;;  %v352_v37 = vld [vmem:[#allocation2 + $0x10] sm:$0xff] }
  0x59   : > { %408 = vmatprep.subr.mxu0 %v387_v11  ;;  %906 = vmatprep.subr.mxu1 %v387_v11  ;;  %v358_v34 = vld [vmem:[#allocation2 + $0x40] sm:$0xff]  ;;  %v359_v36 = vld [vmem:[#allocation2 + $0x48] sm:$0xff]  ;;  %v360_v38 = vld [vmem:[#allocation2 + $0x50] sm:$0xff]  ;;  %p1112_p6 = pnand %p1111_p4, %p1105_p1 }
  0x5a   : > { %409 = vmatpush1.msra.mxu0 %v386_v12  ;;  %922 = vmatpush1.msra.mxu1 %v386_v12  ;;  %v353_v39 = vld [vmem:[#allocation2 + $0x18] sm:$0xff]  ;;  %v354_v41 = vld [vmem:[#allocation2 + $0x20] sm:$0xff]  ;;  %v355_v43 = vld [vmem:[#allocation2 + $0x28] sm:$0xff] }
  0x5b   : > { %410 = vmatprep.subr.mxu0 %v385_v13  ;;  %907 = vmatprep.subr.mxu1 %v385_v13  ;;  %v361_v40 = vld [vmem:[#allocation2 + $0x58] sm:$0xff]  ;;  %v362_v42 = vld [vmem:[#allocation2 + $0x60] sm:$0xff]  ;;  %v363_v44 = vld [vmem:[#allocation2 + $0x68] sm:$0xff] }
  0x5c   : > { %411 = vmatpush1.msra.mxu0 %v384_v14  ;;  %923 = vmatpush1.msra.mxu1 %v384_v14  ;;  %v356_v45 = vld [vmem:[#allocation2 + $0x30] sm:$0xff]  ;;  %v357_v47 = vld [vmem:[#allocation2 + $0x38] sm:$0xff]  ;;  %v658_v52 = vld [vmem:[%s248_s23] sm:$0x3] }
  0x5d   : > { %412 = vmatprep.subr.mxu0 %v383_v15  ;;  %908 = vmatprep.subr.mxu1 %v383_v15  ;;  %v364_v46 = vld [vmem:[#allocation2 + $0x70] sm:$0xff]  ;;  %v365_v48 = vld [vmem:[#allocation2 + $0x78] sm:$0xff]  ;;  %v1419_v54 = vrot.slane %v658_v52, %v662_v51  ;;  %v1421_v57 = vrot.slane %v658_v52, %v666_v53 }
  0x5e   : > { %413 = vmatpush1.msra.mxu0 %v382_v16  ;;  %924 = vmatpush1.msra.mxu1 %v382_v16 }
  0x5f   : > { %414 = vmatprep.subr.mxu0 %v381_v17  ;;  %909 = vmatprep.subr.mxu1 %v381_v17 }
  0x60   : > { %415 = vmatpush1.msra.mxu0 %v380_v18  ;;  %925 = vmatpush1.msra.mxu1 %v380_v18 }
  0x61   : > { %416 = vmatprep.subr.mxu0 %v379_v19  ;;  %910 = vmatprep.subr.mxu1 %v379_v19 }
  0x62   : > { %417 = vmatpush1.msra.mxu0 %v378_v20  ;;  %926 = vmatpush1.msra.mxu1 %v378_v20 }
  0x63   : > { %418 = vmatprep.subr.mxu0 %v377_v21  ;;  %911 = vmatprep.subr.mxu1 %v377_v21 }
  0x64   : > { %419 = vmatpush1.msra.mxu0 %v376_v22  ;;  %927 = vmatpush1.msra.mxu1 %v376_v22 }
  0x65   : > { %420 = vmatprep.subr.mxu0 %v375_v23  ;;  %912 = vmatprep.subr.mxu1 %v375_v23 }
  0x66   : > { %421 = vmatpush1.msra.mxu0 %v374_v24  ;;  %928 = vmatpush1.msra.mxu1 %v374_v24 }
  0x67   : > { %422 = vmatprep.subr.mxu0 %v373_v25  ;;  %913 = vmatprep.subr.mxu1 %v373_v25 }
  0x68   : > { %423 = vmatpush1.msra.mxu0 %v372_v26  ;;  %929 = vmatpush1.msra.mxu1 %v372_v26 }
  0x69   : > { %424 = vmatprep.subr.mxu0 %v371_v27  ;;  %914 = vmatprep.subr.mxu1 %v371_v27 }
  0x6a   : > { %425 = vmatpush1.msra.mxu0 %v370_v28  ;;  %930 = vmatpush1.msra.mxu1 %v370_v28 }
  0x6b   : > { %426 = vmatprep.subr.mxu0 %v369_v29  ;;  %915 = vmatprep.subr.mxu1 %v369_v29 }
  0x6c   : > { %427 = vmatpush1.msra.mxu0 %v368_v30  ;;  %931 = vmatpush1.msra.mxu1 %v368_v30 }
  0x6d   : > { %428 = vmatprep.subr.mxu0 %v367_v31  ;;  %916 = vmatprep.subr.mxu1 %v367_v31 }
  0x6e   : > { %429 = vmatpush1.msra.mxu0 %v366_v32  ;;  %932 = vmatpush1.msra.mxu1 %v366_v32 }
  0x6f   : > { %463 = vmatmul.mubr.f32.vlgmr.msra.gmra.mxu0 %v350_v33  ;;  %511 = vmatmul.mubr.f32.vlgmr.msra.gmra.mxu1 %v358_v34 }
  0x70   : > { %468 = vmatprep.mubr.f32.mxu0 %v1196_v0  ;;  %516 = vmatprep.mubr.f32.mxu1 %v1196_v0 }
  0x73   : > { %469 = vmatmul.mubr.f32.gmra.mxu0 %v351_v35  ;;  %517 = vmatmul.mubr.f32.gmra.mxu1 %v359_v36 }
  0x74   : > { %474 = vmatprep.mubr.f32.mxu0 %v1196_v0  ;;  %522 = vmatprep.mubr.f32.mxu1 %v1196_v0 }
  0x77   : > { %475 = vmatmul.mubr.f32.gmra.mxu0 %v352_v37  ;;  %523 = vmatmul.mubr.f32.gmra.mxu1 %v360_v38 }
  0x78   : > { %480 = vmatprep.mubr.f32.mxu0 %v1196_v0  ;;  %528 = vmatprep.mubr.f32.mxu1 %v1196_v0 }
  0x7b   : > { %481 = vmatmul.mubr.f32.gmra.mxu0 %v353_v39  ;;  %529 = vmatmul.mubr.f32.gmra.mxu1 %v361_v40 }
  0x7c   : > { %486 = vmatprep.mubr.f32.mxu0 %v1196_v0  ;;  %534 = vmatprep.mubr.f32.mxu1 %v1196_v0 }
  0x7f   : > { %487 = vmatmul.mubr.f32.gmra.mxu0 %v354_v41  ;;  %535 = vmatmul.mubr.f32.gmra.mxu1 %v362_v42 }
  0x80   : > { %492 = vmatprep.mubr.f32.mxu0 %v1196_v0  ;;  %540 = vmatprep.mubr.f32.mxu1 %v1196_v0 }
  0x83   : > { %493 = vmatmul.mubr.f32.gmra.mxu0 %v355_v43  ;;  %541 = vmatmul.mubr.f32.gmra.mxu1 %v363_v44 }
  0x84   : > { %498 = vmatprep.mubr.f32.mxu0 %v1196_v0  ;;  %546 = vmatprep.mubr.f32.mxu1 %v1196_v0 }
  0x87   : > { %499 = vmatmul.mubr.f32.gmra.mxu0 %v356_v45  ;;  %547 = vmatmul.mubr.f32.gmra.mxu1 %v364_v46 }
  0x88   : > { %504 = vmatprep.mubr.f32.mxu0 %v1196_v0  ;;  %552 = vmatprep.mubr.f32.mxu1 %v1196_v0 }
  0x8b   : > { %505 = vmatmul.mubr.f32.gmra.mxu0 %v357_v47  ;;  %553 = vmatmul.mubr.f32.gmra.mxu1 %v365_v48 }
 0x12f   : > { %v464_v55 = vpop.f32.mrf.mxu0  ;;  %v512_v56 = vpop.f32.mrf.mxu1 }
 0x130   : > { %v670_v60 = vadd.f32 %v1419_v54, %v464_v55  ;;  %v686_v61 = vadd.f32 %v1419_v54, %v512_v56 }
 0x131   : > { %v466_v58 = vpop.f32.mrf.mxu0  ;;  %v514_v59 = vpop.f32.mrf.mxu1 }
 0x132   : > { %702 = vst [vmem:[%s1427_s27] sm:$0xff] %v670_v60  ;;  %718 = vst [vmem:[%s1427_s27 + $0x80] sm:$0xff] %v686_v61  ;;  %v671_v0 = vadd.f32 %v1421_v57, %v466_v58  ;;  %v687_v1 = vadd.f32 %v1421_v57, %v514_v59 }
 0x133   : > { %v470_v62 = vpop.f32.mrf.mxu0  ;;  %v518_v63 = vpop.f32.mrf.mxu1 }
 0x134   : > { %703 = vst [vmem:[%s1427_s27 + $0x8] sm:$0xff] %v671_v0  ;;  %719 = vst [vmem:[%s1427_s27 + $0x88] sm:$0xff] %v687_v1  ;;  %v672_v4 = vadd.f32 %v1419_v54, %v470_v62  ;;  %v688_v5 = vadd.f32 %v1419_v54, %v518_v63 }
 0x135   : > { %v472_v2 = vpop.f32.mrf.mxu0  ;;  %v520_v3 = vpop.f32.mrf.mxu1 }
 0x136   : > { %704 = vst [vmem:[%s1427_s27 + $0x10] sm:$0xff] %v672_v4  ;;  %720 = vst [vmem:[%s1427_s27 + $0x90] sm:$0xff] %v688_v5  ;;  %v673_v8 = vadd.f32 %v1421_v57, %v472_v2  ;;  %v689_v9 = vadd.f32 %v1421_v57, %v520_v3 }
 0x137   : > { %v476_v6 = vpop.f32.mrf.mxu0  ;;  %v524_v7 = vpop.f32.mrf.mxu1 }
 0x138   : > { %705 = vst [vmem:[%s1427_s27 + $0x18] sm:$0xff] %v673_v8  ;;  %721 = vst [vmem:[%s1427_s27 + $0x98] sm:$0xff] %v689_v9  ;;  %v674_v12 = vadd.f32 %v1419_v54, %v476_v6  ;;  %v690_v13 = vadd.f32 %v1419_v54, %v524_v7 }
 0x139   : > { %v478_v10 = vpop.f32.mrf.mxu0  ;;  %v526_v11 = vpop.f32.mrf.mxu1 }
 0x13a   : > { %706 = vst [vmem:[%s1427_s27 + $0x20] sm:$0xff] %v674_v12  ;;  %722 = vst [vmem:[%s1427_s27 + $0xa0] sm:$0xff] %v690_v13  ;;  %v675_v16 = vadd.f32 %v1421_v57, %v478_v10  ;;  %v691_v17 = vadd.f32 %v1421_v57, %v526_v11 }
 0x13b   : > { %v482_v14 = vpop.f32.mrf.mxu0  ;;  %v530_v15 = vpop.f32.mrf.mxu1 }
 0x13c   : > { %707 = vst [vmem:[%s1427_s27 + $0x28] sm:$0xff] %v675_v16  ;;  %723 = vst [vmem:[%s1427_s27 + $0xa8] sm:$0xff] %v691_v17  ;;  %v676_v20 = vadd.f32 %v1419_v54, %v482_v14  ;;  %v692_v21 = vadd.f32 %v1419_v54, %v530_v15 }
 0x13d   : > { %v484_v18 = vpop.f32.mrf.mxu0  ;;  %v532_v19 = vpop.f32.mrf.mxu1 }
 0x13e   : > { %708 = vst [vmem:[%s1427_s27 + $0x30] sm:$0xff] %v676_v20  ;;  %724 = vst [vmem:[%s1427_s27 + $0xb0] sm:$0xff] %v692_v21  ;;  %v677_v24 = vadd.f32 %v1421_v57, %v484_v18  ;;  %v693_v25 = vadd.f32 %v1421_v57, %v532_v19 }
 0x13f   : > { %v488_v22 = vpop.f32.mrf.mxu0  ;;  %v536_v23 = vpop.f32.mrf.mxu1 }
 0x140   : > { %709 = vst [vmem:[%s1427_s27 + $0x38] sm:$0xff] %v677_v24  ;;  %725 = vst [vmem:[%s1427_s27 + $0xb8] sm:$0xff] %v693_v25  ;;  %v678_v28 = vadd.f32 %v1419_v54, %v488_v22  ;;  %v694_v29 = vadd.f32 %v1419_v54, %v536_v23 }
 0x141   : > { %v490_v26 = vpop.f32.mrf.mxu0  ;;  %v538_v27 = vpop.f32.mrf.mxu1 }
 0x142   : > { %710 = vst [vmem:[%s1427_s27 + $0x40] sm:$0xff] %v678_v28  ;;  %726 = vst [vmem:[%s1427_s27 + $0xc0] sm:$0xff] %v694_v29  ;;  %v679_v32 = vadd.f32 %v1421_v57, %v490_v26  ;;  %v695_v33 = vadd.f32 %v1421_v57, %v538_v27 }
 0x143   : > { %v494_v30 = vpop.f32.mrf.mxu0  ;;  %v542_v31 = vpop.f32.mrf.mxu1 }
 0x144   : > { %711 = vst [vmem:[%s1427_s27 + $0x48] sm:$0xff] %v679_v32  ;;  %727 = vst [vmem:[%s1427_s27 + $0xc8] sm:$0xff] %v695_v33  ;;  %v680_v36 = vadd.f32 %v1419_v54, %v494_v30  ;;  %v696_v37 = vadd.f32 %v1419_v54, %v542_v31 }
 0x145   : > { %v496_v34 = vpop.f32.mrf.mxu0  ;;  %v544_v35 = vpop.f32.mrf.mxu1 }
 0x146   : > { %712 = vst [vmem:[%s1427_s27 + $0x50] sm:$0xff] %v680_v36  ;;  %728 = vst [vmem:[%s1427_s27 + $0xd0] sm:$0xff] %v696_v37  ;;  %v681_v40 = vadd.f32 %v1421_v57, %v496_v34  ;;  %v697_v41 = vadd.f32 %v1421_v57, %v544_v35 }
 0x147   : > { %v500_v38 = vpop.f32.mrf.mxu0  ;;  %v548_v39 = vpop.f32.mrf.mxu1 }
 0x148   : > { %713 = vst [vmem:[%s1427_s27 + $0x58] sm:$0xff] %v681_v40  ;;  %729 = vst [vmem:[%s1427_s27 + $0xd8] sm:$0xff] %v697_v41  ;;  %v682_v44 = vadd.f32 %v1419_v54, %v500_v38  ;;  %v698_v45 = vadd.f32 %v1419_v54, %v548_v39 }
 0x149   : > { %v502_v42 = vpop.f32.mrf.mxu0  ;;  %v550_v43 = vpop.f32.mrf.mxu1 }
 0x14a   : > { %714 = vst [vmem:[%s1427_s27 + $0x60] sm:$0xff] %v682_v44  ;;  %730 = vst [vmem:[%s1427_s27 + $0xe0] sm:$0xff] %v698_v45  ;;  %v683_v48 = vadd.f32 %v1421_v57, %v502_v42  ;;  %v699_v49 = vadd.f32 %v1421_v57, %v550_v43 }
 0x14b   : > { %v506_v46 = vpop.f32.mrf.mxu0  ;;  %v554_v47 = vpop.f32.mrf.mxu1 }
 0x14c   : > { %715 = vst [vmem:[%s1427_s27 + $0x68] sm:$0xff] %v683_v48  ;;  %731 = vst [vmem:[%s1427_s27 + $0xe8] sm:$0xff] %v699_v49  ;;  %v684_v52 = vadd.f32 %v1419_v54, %v506_v46  ;;  %v700_v53 = vadd.f32 %v1419_v54, %v554_v47 }
 0x14d   : > { %v508_v50 = vpop.f32.mrf.mxu0  ;;  %v556_v51 = vpop.f32.mrf.mxu1 }
 0x14e   : > { %716 = vst [vmem:[%s1427_s27 + $0x70] sm:$0xff] %v684_v52  ;;  %732 = vst [vmem:[%s1427_s27 + $0xf0] sm:$0xff] %v700_v53  ;;  %v685_v55 = vadd.f32 %v1421_v57, %v508_v50  ;;  %v701_v56 = vadd.f32 %v1421_v57, %v556_v51 }
 0x150   : > { %717 = vst [vmem:[%s1427_s27 + $0x78] sm:$0xff] %v685_v55  ;;  %733 = vst [vmem:[%s1427_s27 + $0xf8] sm:$0xff] %v701_v56 }
 0x151   : > { %1115 = shalt.err (!%p1112_p6)
}
 0x152   : > { %s1116_s30 = scalar_lea.hbm %s1490_s6, 4096  ;;  %s1120_s5 = scalar_lea.hbm %s1549_s3, 8192 }
 0x153   : > { %p1117_p8 = scmp.ne.s32.totalorder %s1490_s6, %s1116_s30  ;;  %p1121_p11 = scmp.lt.s32.totalorder %s1490_s6, %s1549_s3 }
 0x154   : > { %p1122_p12 = scmp.lt.s32.totalorder %s1120_s5, %s1116_s30 }
 0x155   : > { %p1118_p5 = pnand %p1117_p8, %p1562_p10 }
 0x156   : > { %p1123_p13 = por %p1122_p12, %p1121_p11 }
 0x157   : > { %p1119_p9 = pneg %p1118_p5 }
 0x159   : > { %p1124_p7 = pnand %p1123_p13, %p1119_p9 }
 0x15b   : > { %1127 = shalt.err (!%p1124_p7)
}
 0x15c   : > { %s1198_s27 = smov 256   ;;  %s1199_s10 = smov 512  }
 0x15d   : > { %s1200_s15 = smov 16  }
 0x15e   : > { %941 = dma.vmem_to_hbm [thread:$0]  (%p1562_p10), %s1492_s19, 4096, %s1490_s6, %s735_s4, %s1198_s27, %s1199_s10, %s1200_s15  }
 0x15f PF: > { %s766_s28 = sand.u32 1, %s1166_s12   ;;  %p1563_p2 = scmp.ne.s32.totalorder %s1556_s26, 0 }
 0x160   : > { %p1564_p1 = scmp.ge.s32.totalorder %s1186_s17, 2  ;;  %s767_s8 = scalar_lea.sflag [#allocation4], %s766_s28 }
 0x162   : > { %p955_p0 = pnand %p1564_p1, %p1563_p2 }
 0x164   : > { %p956_p3 = pneg %p955_p0 }
 0x166   : > { %1161 = dma.done.wait (%p956_p3), %s767_s8, 4096  }
 0x167   : > { %1163 = vsyncadd (%p956_p3), %s767_s8, 4294963200  ;;  %s20_s17 = sadd.s32 1, %s1186_s17   ;;  %s1565_s12 = smov %s1170_s13 }
 0x168   : > { %p17_p4 = scmp.ge.s32.totalorder %s20_s17, 4   ;;  %s1566_s13 = smov %s1174_s14 }
 0x169   : > { %s1567_s14 = smov %s1269_s24  ;;  %s1568_s15 = smov %s1182_s16 }
 0x16a   : > { %s1569_s16 = smov %s1571_s18  ;;  %19 = sbr.rel (!%p17_p4) target bundleno = 7 (0x7), region = 102 }
 0x16f   :  { %772 = vsyncpa [#allocation3], 1 }
 0x170   :  { %774 = vsyncpa [#allocation3 + $0x1], 1 }
 0x171   :  { %775 = vsyncpa [#allocation6], 1 }
 0x172   :  { %777 = vsyncpa [#allocation6 + $0x1], 1 }
 0x173   :  { %778 = vsyncpa [#allocation4], 1 }
 0x174   :  { %780 = vsyncpa [#allocation4 + $0x1], 1 }

</bundles_post_ra>
